<compile_context>
chip_gen: v7x
topology: tpu7x:2x2x1
jax: 0.10.0
libtpu: 0.0.40
codegen_flags: <defaults>
</compile_context>

<pallas_src>
import math

import jax
import jax.numpy as jnp
from jax import lax
from jax.experimental import pallas as pl
from jax.experimental.pallas import tpu as pltpu

EPS = 1e-8  # torch F.cosine_similarity default eps


def _graphsage_cosine_kernel(self_u_ref, self_v_ref, adj_u_ref, adj_v_ref,
                             featsT_ref, w_ref, out_ref):
    tb = out_ref.shape[-1]            # pairs per tile (lane axis)

    featsT = featsT_ref[...]          # (F, N)      resident
    w = w_ref[...]                    # (D, 2F)     resident (torch enc.weight)

    # Stack u|v along the lane axis -> one big M for each matmul.
    adjT = jnp.concatenate([adj_u_ref[...], adj_v_ref[...]], axis=1)     # (N, 2TB)
    selfT = jnp.concatenate([self_u_ref[...], self_v_ref[...]], axis=1)  # (F, 2TB)

    # MeanAggregator: row-normalized adjacency x features (transposed orientation).
    neighT = jnp.dot(featsT, adjT, preferred_element_type=jnp.float32)   # (F, 2TB)

    # Encoder: relu(W @ concat(self, neigh).t())  -> (D, 2TB)
    xT = jnp.concatenate([selfT, neighT], axis=0)                        # (2F, 2TB)
    emb = jnp.maximum(jnp.dot(w, xT, preferred_element_type=jnp.float32), 0.0)

    eu = emb[:, :tb]                  # (D, TB)
    ev = emb[:, tb:]                  # (D, TB)

    # torch cosine_similarity(eu, ev, dim=embed, eps=1e-8):
    #   w12 / sqrt(clamp_min(w1 * w2, eps^2))  ==  w12 * rsqrt(max(w1*w2, eps^2))
    w12 = jnp.sum(eu * ev, axis=0, keepdims=True)     # (1, TB) lane-dense
    w1 = jnp.sum(eu * eu, axis=0, keepdims=True)
    w2 = jnp.sum(ev * ev, axis=0, keepdims=True)
    out_ref[...] = w12 * lax.rsqrt(jnp.maximum(w1 * w2, EPS * EPS))


def graphsage_cosine(self_u, self_v, adj_u, adj_v, feats, enc_weight, *, tb=256):
    """Forward pass of UnsupervisedGraphSage for a batch of (u, v) pairs.

    self_u, self_v : (B, F)  gathered raw features of u / v nodes
    adj_u, adj_v   : (B, N)  row-normalized adjacency rows of u / v nodes
    feats          : (N, F)  full node-feature table
    enc_weight     : (D, 2F) encoder weight (torch layout: W @ [self; neigh].t())
    Returns scores of shape (B,), float32.
    """
    b, f = self_u.shape
    n = feats.shape[0]
    d = enc_weight.shape[0]

    n_tiles = pl.cdiv(b, tb)
    b_pad = n_tiles * tb
    pad = b_pad - b

    def prep(x):  # (B, K) -> (K, B_pad): pair axis onto lanes, zero-pad tail
        xt = x.T
        if pad:
            xt = jnp.pad(xt, ((0, 0), (0, pad)))
        return xt

    su, sv = prep(self_u), prep(self_v)       # (F, B_pad)
    au, av = prep(adj_u), prep(adj_v)         # (N, B_pad)
    featsT = feats.T                          # (F, N)

    out = pl.pallas_call(
        _graphsage_cosine_kernel,
        out_shape=jax.ShapeDtypeStruct((1, b_pad), jnp.float32),
        grid=(n_tiles,),
        in_specs=[
            pl.BlockSpec((f, tb), lambda i: (0, i)),      # selfT_u tile
            pl.BlockSpec((f, tb), lambda i: (0, i)),      # selfT_v tile
            pl.BlockSpec((n, tb), lambda i: (0, i)),      # adjT_u tile
            pl.BlockSpec((n, tb), lambda i: (0, i)),      # adjT_v tile
            pl.BlockSpec((f, n), lambda i: (0, 0)),       # featsT (resident)
            pl.BlockSpec((d, 2 * f), lambda i: (0, 0)),   # enc weight (resident)
        ],
        out_specs=pl.BlockSpec((1, tb), lambda i: (0, i)),
        compiler_params=pltpu.CompilerParams(
            dimension_semantics=("parallel",)),
    )(su, sv, au, av, featsT, enc_weight)

    return out[0, :b]


def reference_scores(self_u, self_v, adj_u, adj_v, feats, enc_weight):
    f = feats.shape[1]
    hi = jax.lax.Precision.HIGHEST
    w_self = enc_weight[:, :f].T    # (F, D)
    w_neigh = enc_weight[:, f:].T   # (F, D)
    neigh_u = jnp.dot(adj_u, feats, precision=hi)
    neigh_v = jnp.dot(adj_v, feats, precision=hi)
    eu = jnp.maximum(jnp.dot(self_u, w_self, precision=hi)
                     + jnp.dot(neigh_u, w_neigh, precision=hi), 0.0)
    ev = jnp.maximum(jnp.dot(self_v, w_self, precision=hi)
                     + jnp.dot(neigh_v, w_neigh, precision=hi), 0.0)
    w12 = jnp.sum(eu * ev, axis=-1)
    w1 = jnp.sum(eu * eu, axis=-1)
    w2 = jnp.sum(ev * ev, axis=-1)
    return w12 / jnp.sqrt(jnp.maximum(w1 * w2, EPS * EPS))


if __name__ == "__main__":
    key = jax.random.PRNGKey(0)
    k_feat, k_adj, k_enc, k_w, k_u, k_v = jax.random.split(key, 6)

    num_nodes = 128   # total nodes in the graph
    feat_dim = 16     # raw feature dim F
    embed_dim = 32    # encoder embed_dim D
    batch = 200       # number of (u, v) pairs (non-multiple of tile to exercise padding)

    # Node feature table (the `features` embedding of the reference GraphSAGE code).
    feats = jax.random.normal(k_feat, (num_nodes, feat_dim), dtype=jnp.float32)

    # Random adjacency (no self loops); guarantee degree >= 1 via a ring edge.
    adj = (jax.random.uniform(k_adj, (num_nodes, num_nodes)) < 0.10).astype(jnp.float32)
    adj = adj * (1.0 - jnp.eye(num_nodes, dtype=jnp.float32))
    ring = jnp.roll(jnp.eye(num_nodes, dtype=jnp.float32), 1, axis=1)
    adj = jnp.maximum(adj, ring)
    deg = jnp.sum(adj, axis=1, keepdims=True)
    adj_norm = adj / deg  # MeanAggregator: mean over neighbor features

    # Encoder weight: nn.Parameter(embed_dim, 2*feat_dim), xavier_uniform_.
    fan_in, fan_out = 2 * feat_dim, embed_dim
    bound = math.sqrt(6.0 / (fan_in + fan_out))
    enc_weight = jax.random.uniform(k_enc, (embed_dim, 2 * feat_dim),
                                    minval=-bound, maxval=bound, dtype=jnp.float32)

    # UnsupervisedGraphSage.weight (1, embed_dim), xavier_uniform_ — unused in forward().
    b2 = math.sqrt(6.0 / (embed_dim + 1))
    _unsup_weight = jax.random.uniform(k_w, (1, embed_dim), minval=-b2, maxval=b2,
                                       dtype=jnp.float32)

    # Batch of node index lists u, v (glue: gather self feats / adjacency rows in JAX).
    u = jax.random.randint(k_u, (batch,), 0, num_nodes, dtype=jnp.int32)
    v = jax.random.randint(k_v, (batch,), 0, num_nodes, dtype=jnp.int32)
    self_u, self_v = feats[u], feats[v]
    adj_u, adj_v = adj_norm[u], adj_norm[v]

    scores = graphsage_cosine(self_u, self_v, adj_u, adj_v, feats, enc_weight)
    jax.block_until_ready(scores)

    ref = reference_scores(self_u, self_v, adj_u, adj_v, feats, enc_weight)
    assert scores.shape == (batch,)
    assert jnp.allclose(scores, ref, atol=1e-4, rtol=1e-4), (scores, ref)

    print("KERNEL_OK")
</pallas_src>

<mosaic_0001>
module attributes {stable_mosaic.version = 11 : i64} {
  func.func @_graphsage_cosine_kernel(%arg0: i32, %arg1: memref<16x256xf32, #tpu.memory_space<vmem>>, %arg2: memref<16x256xf32, #tpu.memory_space<vmem>>, %arg3: memref<128x256xf32, #tpu.memory_space<vmem>>, %arg4: memref<128x256xf32, #tpu.memory_space<vmem>>, %arg5: memref<16x128xf32, #tpu.memory_space<vmem>>, %arg6: memref<32x32xf32, #tpu.memory_space<vmem>>, %arg7: memref<1x256xf32, #tpu.memory_space<vmem>>) attributes {dimension_semantics = [#tpu.dimension_semantics<parallel>], iteration_bounds = array<i64: 1>, scalar_prefetch = 0 : i64, scratch_operands = 0 : i64, tpu.core_type = #tpu.core_type<tc>, window_params = [{transform_indices = @transform_0, window_bounds = array<i64: 16, 256>}, {transform_indices = @transform_1, window_bounds = array<i64: 16, 256>}, {transform_indices = @transform_2, window_bounds = array<i64: 128, 256>}, {transform_indices = @transform_3, window_bounds = array<i64: 128, 256>}, {pipeline_mode = #tpu.pipeline_mode<synchronous>, transform_indices = @transform_4, window_bounds = array<i64: 16, 128>}, {pipeline_mode = #tpu.pipeline_mode<synchronous>, transform_indices = @transform_5, window_bounds = array<i64: 32, 32>}, {transform_indices = @transform_6, window_bounds = array<i64: 1, 256>}]} {
    %c0 = arith.constant 0 : index
    %c0_0 = arith.constant 0 : index
    %0 = vector.load %arg5[%c0, %c0_0] : memref<16x128xf32, #tpu.memory_space<vmem>>, vector<16x128xf32>
    %c0_1 = arith.constant 0 : index
    %c0_2 = arith.constant 0 : index
    %1 = vector.load %arg6[%c0_1, %c0_2] : memref<32x32xf32, #tpu.memory_space<vmem>>, vector<32x32xf32>
    %c0_3 = arith.constant 0 : index
    %c0_4 = arith.constant 0 : index
    %2 = vector.load %arg3[%c0_3, %c0_4] : memref<128x256xf32, #tpu.memory_space<vmem>>, vector<128x256xf32>
    %c0_5 = arith.constant 0 : index
    %c0_6 = arith.constant 0 : index
    %3 = vector.load %arg4[%c0_5, %c0_6] : memref<128x256xf32, #tpu.memory_space<vmem>>, vector<128x256xf32>
    %4 = tpu.concatenate %2, %3 in 1 : vector<128x256xf32>, vector<128x256xf32> -> vector<128x512xf32>
    %c0_7 = arith.constant 0 : index
    %c0_8 = arith.constant 0 : index
    %5 = vector.load %arg1[%c0_7, %c0_8] : memref<16x256xf32, #tpu.memory_space<vmem>>, vector<16x256xf32>
    %c0_9 = arith.constant 0 : index
    %c0_10 = arith.constant 0 : index
    %6 = vector.load %arg2[%c0_9, %c0_10] : memref<16x256xf32, #tpu.memory_space<vmem>>, vector<16x256xf32>
    %7 = tpu.concatenate %5, %6 in 1 : vector<16x256xf32>, vector<16x256xf32> -> vector<16x512xf32>
    %cst = arith.constant dense<0.000000e+00> : vector<16x512xf32>
    %8 = tpu.matmul %0, %4, %cst {dimension_numbers = #tpu.dot_dimension_numbers<[1], [0], [0], [1], [0, 0, 1, 1], [], []>} : vector<16x128xf32>, vector<128x512xf32>, vector<16x512xf32> -> vector<16x512xf32>
    %9 = tpu.concatenate %7, %8 in 0 : vector<16x512xf32>, vector<16x512xf32> -> vector<32x512xf32>
    %cst_11 = arith.constant dense<0.000000e+00> : vector<32x512xf32>
    %10 = tpu.matmul %1, %9, %cst_11 {dimension_numbers = #tpu.dot_dimension_numbers<[1], [0], [0], [1], [0, 0, 1, 1], [], []>} : vector<32x32xf32>, vector<32x512xf32>, vector<32x512xf32> -> vector<32x512xf32>
    %cst_12 = arith.constant 0.000000e+00 : f32
    %11 = vector.broadcast %cst_12 : f32 to vector<32x512xf32>
    %12 = arith.maximumf %10, %11 : vector<32x512xf32>
    %13 = vector.extract_strided_slice %12 {offsets = [0, 0], sizes = [32, 256], strides = [1, 1]} : vector<32x512xf32> to vector<32x256xf32>
    %14 = vector.extract_strided_slice %12 {offsets = [0, 256], sizes = [32, 256], strides = [1, 1]} : vector<32x512xf32> to vector<32x256xf32>
    %15 = arith.mulf %13, %14 : vector<32x256xf32>
    %cst_13 = arith.constant dense<0.000000e+00> : vector<256xf32>
    %16 = vector.multi_reduction <add>, %15, %cst_13 [0] : vector<32x256xf32> to vector<256xf32>
    %17 = vector.shape_cast %16 : vector<256xf32> to vector<1x256xf32>
    %18 = arith.mulf %13, %13 : vector<32x256xf32>
    %cst_14 = arith.constant dense<0.000000e+00> : vector<256xf32>
    %19 = vector.multi_reduction <add>, %18, %cst_14 [0] : vector<32x256xf32> to vector<256xf32>
    %20 = vector.shape_cast %19 : vector<256xf32> to vector<1x256xf32>
    %21 = arith.mulf %14, %14 : vector<32x256xf32>
    %cst_15 = arith.constant dense<0.000000e+00> : vector<256xf32>
    %22 = vector.multi_reduction <add>, %21, %cst_15 [0] : vector<32x256xf32> to vector<256xf32>
    %23 = vector.shape_cast %22 : vector<256xf32> to vector<1x256xf32>
    %24 = arith.mulf %20, %23 : vector<1x256xf32>
    %cst_16 = arith.constant 1.000000e-16 : f32
    %25 = vector.broadcast %cst_16 : f32 to vector<1x256xf32>
    %26 = arith.maximumf %24, %25 : vector<1x256xf32>
    %27 = math.rsqrt %26 : vector<1x256xf32>
    %28 = arith.mulf %17, %27 : vector<1x256xf32>
    %c0_17 = arith.constant 0 : index
    %c0_18 = arith.constant 0 : index
    %29 = vector.load %arg7[%c0_17, %c0_18] : memref<1x256xf32, #tpu.memory_space<vmem>>, vector<1x256xf32>
    tpu.vector_store %arg7[%c0_17, %c0_18], %28 {strides = array<i32>} : memref<1x256xf32, #tpu.memory_space<vmem>>, vector<1x256xf32>,
    return
  }
  func.func @transform_0(%arg0: i32) -> (i32, i32) {
    %c0_i32 = arith.constant 0 : i32
    %c0_i32_0 = arith.constant 0 : i32
    return %c0_i32, %arg0 : i32, i32
  }
  func.func @transform_1(%arg0: i32) -> (i32, i32) {
    %c0_i32 = arith.constant 0 : i32
    %c0_i32_0 = arith.constant 0 : i32
    return %c0_i32, %arg0 : i32, i32
  }
  func.func @transform_2(%arg0: i32) -> (i32, i32) {
    %c0_i32 = arith.constant 0 : i32
    %c0_i32_0 = arith.constant 0 : i32
    return %c0_i32, %arg0 : i32, i32
  }
  func.func @transform_3(%arg0: i32) -> (i32, i32) {
    %c0_i32 = arith.constant 0 : i32
    %c0_i32_0 = arith.constant 0 : i32
    return %c0_i32, %arg0 : i32, i32
  }
  func.func @transform_4(%arg0: i32) -> (i32, i32) {
    %c0_i32 = arith.constant 0 : i32
    %c0_i32_0 = arith.constant 0 : i32
    %c0_i32_1 = arith.constant 0 : i32
    return %c0_i32, %c0_i32_0 : i32, i32
  }
  func.func @transform_5(%arg0: i32) -> (i32, i32) {
    %c0_i32 = arith.constant 0 : i32
    %c0_i32_0 = arith.constant 0 : i32
    %c0_i32_1 = arith.constant 0 : i32
    return %c0_i32, %c0_i32_0 : i32, i32
  }
  func.func @transform_6(%arg0: i32) -> (i32, i32) {
    %c0_i32 = arith.constant 0 : i32
    %c0_i32_0 = arith.constant 0 : i32
    return %c0_i32, %arg0 : i32, i32
  }
}

</mosaic_0001>

<bundles_post_ra>
// kernel: tpu_custom_call.1
= control target key start
LH: loop header
LB: loop body
LE: loop exit
PB: predicated region body
PF: predicated region fallthrough
CT: control target
= control target key end

     0   :  { %11 = vsyncpa [#allocation3], 0  ;;  %s1119_s0 = inlined_call_operand.hbm [shape: f32[16,256], index: 0, kind: input, shape index: {}]   ;;  %s1120_s1 = inlined_call_operand.hbm [shape: f32[16,256], index: 1, kind: input, shape index: {}]   ;;  %s1121_s2 = inlined_call_operand.hbm [shape: f32[128,256], index: 2, kind: input, shape index: {}]   ;;  %s1122_s3 = inlined_call_operand.hbm [shape: f32[128,256], index: 3, kind: input, shape index: {}]   ;;  %s1123_s4 = inlined_call_operand.hbm [shape: f32[16,128], index: 4, kind: input, shape index: {}]   ;;  %s1124_s5 = inlined_call_operand.hbm [shape: f32[32,32], index: 5, kind: input, shape index: {}]   ;;  %s1125_s6 = inlined_call_operand.hbm [shape: f32[1,256], index: 6, kind: output, shape index: {}]  }
   0x1   :  { %12 = vsyncpa [#allocation6], 0 }
   0x2   :  { %13 = vsyncpa [#allocation9], 0 }
   0x3   :  { %14 = vsyncpa [#allocation12], 0 }
   0x4   :  { %15 = vsyncpa [#allocation4], 0  ;;  %s941_s21 = smov [#allocation5]   ;;  %s942_s23 = smov [#allocation8]  }
   0x5   :  { %s33_s22 = sshll.u32 %s941_s21, 4  ;;  %s57_s24 = sshll.u32 %s942_s23, 4  ;;  %s34_s22 = int_to_ptr.vmem [resolvable:$true] %s33_s22  ;;  %s989_s24 = int_to_ptr.vmem [resolvable:$true] %s57_s24 }
   0x6   :  { %s777_s27 = scalar_lea.hbm %s1120_s1, 512 }
   0x7   :  { %p778_p0 = scmp.ne.s32.totalorder %s1120_s1, %s777_s27  ;;  %p781_p1 = scmp.lt.u32.totalorder %s777_s27, %s1120_s1 }
   0x9   :  { %p783_p2 = pnand %p781_p1, %p778_p0 }
   0xb   :  { %786 = shalt.err (!%p783_p2)
}
   0xc   :  { %s787_s8 = scalar_lea.vmem %s34_s22, 512  ;;  %p792_p4 = scmp.lt.s32.totalorder %s34_s22, %s34_s22 }
   0xd   :  { %p788_p3 = scmp.ne.s32.totalorder %s34_s22, %s787_s8  ;;  %p793_p5 = scmp.lt.s32.totalorder %s787_s8, %s787_s8 }
   0xf   :  { %p794_p6 = por %p793_p5, %p792_p4 }
  0x11   :  { %p795_p7 = pnand %p794_p6, %p788_p3 }
  0x13   :  { %798 = shalt.err (!%p795_p7)
}
  0x14   :  { %s943_s9 = smov 256   ;;  %s944_s10 = smov 16  }
  0x15   :  { %39 = dma.hbm_to_vmem [thread:$0]  %s1120_s1, 512, %s34_s22, [#allocation6], %s943_s9, %s943_s9, %s944_s10  }
  0x16   :  { %s799_s15 = scalar_lea.hbm %s1122_s3, 4096 }
  0x17   :  { %p800_p8 = scmp.ne.s32.totalorder %s1122_s3, %s799_s15  ;;  %p803_p9 = scmp.lt.u32.totalorder %s799_s15, %s1122_s3 }
  0x19   :  { %p805_p10 = pnand %p803_p9, %p800_p8 }
  0x1b   :  { %808 = shalt.err (!%p805_p10)
}
  0x1c   :  { %s809_s20 = scalar_lea.vmem %s989_s24, 4096  ;;  %p814_p12 = scmp.lt.s32.totalorder %s989_s24, %s989_s24 }
  0x1d   :  { %p810_p11 = scmp.ne.s32.totalorder %s989_s24, %s809_s20  ;;  %p815_p13 = scmp.lt.s32.totalorder %s809_s20, %s809_s20 }
  0x1f   :  { %p816_p0 = por %p815_p13, %p814_p12 }
  0x21   :  { %p817_p1 = pnand %p816_p0, %p810_p11 }
  0x23   :  { %820 = shalt.err (!%p817_p1)
}
  0x24   :  { %63 = dma.hbm_to_vmem [thread:$0]  %s1122_s3, 4096, %s989_s24, [#allocation9], %s943_s9, %s943_s9, %s944_s10  }
  0x25   :  { %s945_s22 = smov [#allocation2]   ;;  %s946_s25 = smov [#allocation7]  }
  0x26   :  { %s21_s23 = sshll.u32 %s945_s22, 4  ;;  %s45_s26 = sshll.u32 %s946_s25, 4  ;;  %s22_s23 = int_to_ptr.vmem [resolvable:$true] %s21_s23  ;;  %s1026_s26 = int_to_ptr.vmem [resolvable:$true] %s45_s26 }
  0x27   :  { %s821_s29 = scalar_lea.hbm %s1119_s0, 512 }
  0x28   :  { %p822_p2 = scmp.ne.s32.totalorder %s1119_s0, %s821_s29  ;;  %p825_p3 = scmp.lt.u32.totalorder %s821_s29, %s1119_s0 }
  0x2a   :  { %p827_p4 = pnand %p825_p3, %p822_p2 }
  0x2c   :  { %830 = shalt.err (!%p827_p4)
}
  0x2d   :  { %s831_s3 = scalar_lea.vmem %s22_s23, 512  ;;  %p836_p6 = scmp.lt.s32.totalorder %s22_s23, %s22_s23 }
  0x2e   :  { %p832_p5 = scmp.ne.s32.totalorder %s22_s23, %s831_s3  ;;  %p837_p7 = scmp.lt.s32.totalorder %s831_s3, %s831_s3 }
  0x30   :  { %p838_p8 = por %p837_p7, %p836_p6 }
  0x32   :  { %p839_p9 = pnand %p838_p8, %p832_p5 }
  0x34   :  { %842 = shalt.err (!%p839_p9)
}
  0x35   :  { %27 = dma.hbm_to_vmem [thread:$0]  %s1119_s0, 512, %s22_s23, [#allocation3], %s943_s9, %s943_s9, %s944_s10  }
  0x36   :  { %s843_s15 = scalar_lea.hbm %s1121_s2, 4096 }
  0x37   :  { %p844_p10 = scmp.ne.s32.totalorder %s1121_s2, %s843_s15  ;;  %p847_p11 = scmp.lt.u32.totalorder %s843_s15, %s1121_s2 }
  0x39   :  { %p849_p12 = pnand %p847_p11, %p844_p10 }
  0x3b   :  { %852 = shalt.err (!%p849_p12)
}
  0x3c   :  { %s853_s20 = scalar_lea.vmem %s1026_s26, 4096  ;;  %p858_p0 = scmp.lt.s32.totalorder %s1026_s26, %s1026_s26 }
  0x3d   :  { %p854_p13 = scmp.ne.s32.totalorder %s1026_s26, %s853_s20  ;;  %p859_p1 = scmp.lt.s32.totalorder %s853_s20, %s853_s20 }
  0x3f   :  { %p860_p2 = por %p859_p1, %p858_p0 }
  0x41   :  { %p861_p3 = pnand %p860_p2, %p854_p13 }
  0x43   :  { %864 = shalt.err (!%p861_p3)
}
  0x44   :  { %51 = dma.hbm_to_vmem [thread:$0]  %s1121_s2, 4096, %s1026_s26, [#allocation6], %s943_s9, %s943_s9, %s944_s10  }
  0x45   :  { %s947_s21 = smov [#allocation10]   ;;  %s865_s27 = scalar_lea.hbm %s1123_s4, 256 }
  0x46   :  { %s69_s22 = sshll.u32 %s947_s21, 4  ;;  %p866_p4 = scmp.ne.s32.totalorder %s1123_s4, %s865_s27  ;;  %s70_s22 = int_to_ptr.vmem [resolvable:$true] %s69_s22 }
  0x47   :  { %p869_p5 = scmp.lt.u32.totalorder %s865_s27, %s1123_s4 }
  0x49   :  { %p871_p6 = pnand %p869_p5, %p866_p4 }
  0x4b   :  { %874 = shalt.err (!%p871_p6)
}
  0x4c   :  { %s875_s8 = scalar_lea.vmem %s70_s22, 256  ;;  %p880_p8 = scmp.lt.s32.totalorder %s70_s22, %s70_s22 }
  0x4d   :  { %p876_p7 = scmp.ne.s32.totalorder %s70_s22, %s875_s8  ;;  %p881_p9 = scmp.lt.s32.totalorder %s875_s8, %s875_s8 }
  0x4f   :  { %p882_p10 = por %p881_p9, %p880_p8 }
  0x51   :  { %p883_p11 = pnand %p882_p10, %p876_p7 }
  0x53   :  { %886 = shalt.err (!%p883_p11)
}
  0x54   :  { %s948_s2 = smov 128   ;;  %s949_s9 = smov 8  }
  0x55   :  { %75 = dma.hbm_to_vmem [thread:$0]  %s1123_s4, 256, %s70_s22, [#allocation9], %s948_s2, %s948_s2, %s949_s9  }
  0x56   :  { %s950_s11 = smov [#allocation11]   ;;  %s887_s13 = scalar_lea.hbm %s1124_s5, 512 }
  0x57   :  { %s81_s3 = sshll.u32 %s950_s11, 4  ;;  %p888_p12 = scmp.ne.s32.totalorder %s1124_s5, %s887_s13  ;;  %s82_s3 = int_to_ptr.vmem [resolvable:$true] %s81_s3 }
  0x58   :  { %p891_p13 = scmp.lt.u32.totalorder %s887_s13, %s1124_s5 }
  0x5a   :  { %p893_p0 = pnand %p891_p13, %p888_p12 }
  0x5c   :  { %896 = shalt.err (!%p893_p0)
}
  0x5d   :  { %s897_s18 = scalar_lea.vmem %s82_s3, 512  ;;  %p902_p2 = scmp.lt.s32.totalorder %s82_s3, %s82_s3 }
  0x5e   :  { %p898_p1 = scmp.ne.s32.totalorder %s82_s3, %s897_s18  ;;  %p903_p3 = scmp.lt.s32.totalorder %s897_s18, %s897_s18 }
  0x60   :  { %p904_p4 = por %p903_p3, %p902_p2 }
  0x62   :  { %p905_p5 = pnand %p904_p4, %p898_p1 }
  0x64   :  { %908 = shalt.err (!%p905_p5)
}
  0x65   :  { %87 = dma.hbm_to_vmem [thread:$0]  %s1124_s5, 512, %s82_s3, [#allocation12], %s948_s2, %s948_s2, %s949_s9  }
  0x66   :  { %931 = dma.done.wait [#allocation3], 512  }
  0x67   :  { %932 = vsyncadd [#allocation3], 4294966784 }
  0x68   :  { %933 = dma.done.wait [#allocation6], 4608  }
  0x69   :  { %934 = vsyncadd [#allocation6], 4294962688 }
  0x6a   :  { %935 = dma.done.wait [#allocation9], 4352  }
  0x6b   :  { %936 = vsyncadd [#allocation9], 4294962944 }
  0x6c   :  { %937 = dma.done.wait [#allocation12], 512  }
  0x6d   :  { %938 = vsyncadd [#allocation12], 4294966784  ;;  %v951_v0 = vmov 0.0   ;;  %v113_v1 = vld [vmem:[#allocation7 + $0x8] sm:$0xff]  ;;  %v115_v2 = vld [vmem:[#allocation7 + $0x18] sm:$0xff]  ;;  %vm338_vm0 = vcmask 261120  }
  0x6e   :  { %248 = vmatprep.mubr.f32.mxu0 %v951_v0  ;;  %325 = vmatprep.mubr.f32.mxu1 %v951_v0  ;;  %v145_v3 = vld [vmem:[#allocation8 + $0x8] sm:$0xff]  ;;  %v680_v4 = vpack.c.bf16 %v115_v2, %v113_v1  ;;  %v147_v5 = vld [vmem:[#allocation8 + $0x18] sm:$0xff]  ;;  %v112_v6 = vld [vmem:[#allocation7] sm:$0xff]  ;;  %s953_s5 = smov [#allocation13]  }
  0x6f   :  { %v114_v7 = vld [vmem:[#allocation7 + $0x10] sm:$0xff]  ;;  %v712_v8 = vpack.c.bf16 %v147_v5, %v145_v3  ;;  %v144_v10 = vld [vmem:[#allocation8] sm:$0xff]  ;;  %v117_v12 = vld [vmem:[#allocation7 + $0x28] sm:$0xff]  ;;  %s660_s20 = sshll.u32 %s953_s5, 4  ;;  %s661_s20 = int_to_ptr.vmem [resolvable:$true] %s660_s20 }
  0x70   :  { %v682_v9 = vpack.c.bf16 %v114_v7, %v112_v6  ;;  %v146_v11 = vld [vmem:[#allocation8 + $0x10] sm:$0xff]  ;;  %681 = vmatprep.subr.bf16.mxu0 %v680_v4  ;;  %v119_v14 = vld [vmem:[#allocation7 + $0x38] sm:$0xff]  ;;  %v149_v15 = vld [vmem:[#allocation8 + $0x28] sm:$0xff]  ;;  %s909_s0 = scalar_lea.vmem %s661_s20, 32  ;;  %p914_p7 = scmp.lt.s32.totalorder %s661_s20, %s661_s20 }
  0x71   :  { %v714_v13 = vpack.c.bf16 %v146_v11, %v144_v10  ;;  %v151_v16 = vld [vmem:[#allocation8 + $0x38] sm:$0xff]  ;;  %713 = vmatprep.subr.bf16.mxu1 %v712_v8  ;;  %v684_v17 = vpack.c.bf16 %v119_v14, %v117_v12  ;;  %v116_v19 = vld [vmem:[#allocation7 + $0x20] sm:$0xff]  ;;  %v118_v20 = vld [vmem:[#allocation7 + $0x30] sm:$0xff]  ;;  %p910_p6 = scmp.ne.s32.totalorder %s661_s20, %s909_s0  ;;  %p915_p8 = scmp.lt.s32.totalorder %s909_s0, %s909_s0 }
  0x72   :  { %683 = vmatpush1.bf16.msra.mxu0 %v682_v9  ;;  %v716_v18 = vpack.c.bf16 %v151_v16, %v149_v15  ;;  %v148_v21 = vld [vmem:[#allocation8 + $0x20] sm:$0xff]  ;;  %v686_v22 = vpack.c.bf16 %v118_v20, %v116_v19  ;;  %v150_v23 = vld [vmem:[#allocation8 + $0x30] sm:$0xff]  ;;  %v121_v24 = vld [vmem:[#allocation7 + $0x48] sm:$0xff] }
  0x73   :  { %715 = vmatpush1.bf16.msra.mxu1 %v714_v13  ;;  %v123_v25 = vld [vmem:[#allocation7 + $0x58] sm:$0xff]  ;;  %685 = vmatprep.subr.bf16.mxu0 %v684_v17  ;;  %v718_v26 = vpack.c.bf16 %v150_v23, %v148_v21  ;;  %v153_v28 = vld [vmem:[#allocation8 + $0x48] sm:$0xff]  ;;  %v120_v30 = vld [vmem:[#allocation7 + $0x40] sm:$0xff]  ;;  %p916_p9 = por %p915_p8, %p914_p7 }
  0x74   :  { %717 = vmatprep.subr.bf16.mxu1 %v716_v18  ;;  %v688_v27 = vpack.c.bf16 %v123_v25, %v121_v24  ;;  %v155_v29 = vld [vmem:[#allocation8 + $0x58] sm:$0xff]  ;;  %v122_v32 = vld [vmem:[#allocation7 + $0x50] sm:$0xff]  ;;  %v152_v33 = vld [vmem:[#allocation8 + $0x40] sm:$0xff] }
  0x75   :  { %v720_v31 = vpack.c.bf16 %v155_v29, %v153_v28  ;;  %v154_v34 = vld [vmem:[#allocation8 + $0x50] sm:$0xff]  ;;  %v690_v35 = vpack.c.bf16 %v122_v32, %v120_v30  ;;  %v125_v36 = vld [vmem:[#allocation7 + $0x68] sm:$0xff]  ;;  %v127_v37 = vld [vmem:[#allocation7 + $0x78] sm:$0xff]  ;;  %p917_p10 = pnand %p916_p9, %p910_p6 }
  0x76   :  { %687 = vmatpush1.bf16.msra.mxu0 %v686_v22  ;;  %v157_v38 = vld [vmem:[#allocation8 + $0x68] sm:$0xff]  ;;  %v722_v39 = vpack.c.bf16 %v154_v34, %v152_v33  ;;  %v692_v40 = vpack.c.bf16 %v127_v37, %v125_v36  ;;  %v159_v41 = vld [vmem:[#allocation8 + $0x78] sm:$0xff]  ;;  %v124_v42 = vld [vmem:[#allocation7 + $0x60] sm:$0xff] }
  0x77   :  { %719 = vmatpush1.bf16.msra.mxu1 %v718_v26  ;;  %689 = vmatprep.subr.bf16.mxu0 %v688_v27  ;;  %v126_v43 = vld [vmem:[#allocation7 + $0x70] sm:$0xff]  ;;  %v724_v44 = vpack.c.bf16 %v159_v41, %v157_v38  ;;  %v156_v45 = vld [vmem:[#allocation8 + $0x60] sm:$0xff]  ;;  %v129_v47 = vld [vmem:[#allocation7 + $0x88] sm:$0xff] }
  0x78   :  { %721 = vmatprep.subr.bf16.mxu1 %v720_v31  ;;  %v158_v46 = vld [vmem:[#allocation8 + $0x70] sm:$0xff]  ;;  %v131_v48 = vld [vmem:[#allocation7 + $0x98] sm:$0xff]  ;;  %v161_v49 = vld [vmem:[#allocation8 + $0x88] sm:$0xff]  ;;  %v694_v51 = vpack.c.bf16 %v126_v43, %v124_v42 }
  0x79   :  { %v163_v50 = vld [vmem:[#allocation8 + $0x98] sm:$0xff]  ;;  %v726_v52 = vpack.c.bf16 %v158_v46, %v156_v45  ;;  %v696_v53 = vpack.c.bf16 %v131_v48, %v129_v47  ;;  %v128_v54 = vld [vmem:[#allocation7 + $0x80] sm:$0xff]  ;;  %v130_v55 = vld [vmem:[#allocation7 + $0x90] sm:$0xff] }
  0x7a   :  { %691 = vmatpush1.bf16.msra.mxu0 %v690_v35  ;;  %v160_v56 = vld [vmem:[#allocation8 + $0x80] sm:$0xff]  ;;  %v728_v57 = vpack.c.bf16 %v163_v50, %v161_v49  ;;  %v162_v58 = vld [vmem:[#allocation8 + $0x90] sm:$0xff]  ;;  %v133_v59 = vld [vmem:[#allocation7 + $0xa8] sm:$0xff]  ;;  %v698_v63 = vpack.c.bf16 %v130_v55, %v128_v54 }
  0x7b   :  { %723 = vmatpush1.bf16.msra.mxu1 %v722_v39  ;;  %693 = vmatprep.subr.bf16.mxu0 %v692_v40  ;;  %v135_v60 = vld [vmem:[#allocation7 + $0xb8] sm:$0xff]  ;;  %v165_v61 = vld [vmem:[#allocation8 + $0xa8] sm:$0xff]  ;;  %v730_v1 = vpack.c.bf16 %v162_v58, %v160_v56  ;;  %v132_v3 = vld [vmem:[#allocation7 + $0xa0] sm:$0xff] }
  0x7c   :  { %725 = vmatprep.subr.bf16.mxu1 %v724_v44  ;;  %v167_v62 = vld [vmem:[#allocation8 + $0xb8] sm:$0xff]  ;;  %v700_v2 = vpack.c.bf16 %v135_v60, %v133_v59  ;;  %v134_v4 = vld [vmem:[#allocation7 + $0xb0] sm:$0xff]  ;;  %v164_v5 = vld [vmem:[#allocation8 + $0xa0] sm:$0xff] }
  0x7d   :  { %v732_v6 = vpack.c.bf16 %v167_v62, %v165_v61  ;;  %v166_v7 = vld [vmem:[#allocation8 + $0xb0] sm:$0xff]  ;;  %v137_v8 = vld [vmem:[#allocation7 + $0xc8] sm:$0xff]  ;;  %v139_v9 = vld [vmem:[#allocation7 + $0xd8] sm:$0xff]  ;;  %v702_v12 = vpack.c.bf16 %v134_v4, %v132_v3 }
  0x7e   :  { %695 = vmatpush1.bf16.msra.mxu0 %v694_v51  ;;  %v169_v10 = vld [vmem:[#allocation8 + $0xc8] sm:$0xff]  ;;  %v171_v11 = vld [vmem:[#allocation8 + $0xd8] sm:$0xff]  ;;  %v734_v13 = vpack.c.bf16 %v166_v7, %v164_v5  ;;  %v704_v14 = vpack.c.bf16 %v139_v9, %v137_v8  ;;  %v136_v15 = vld [vmem:[#allocation7 + $0xc0] sm:$0xff] }
  0x7f   :  { %727 = vmatpush1.bf16.msra.mxu1 %v726_v52  ;;  %697 = vmatprep.subr.bf16.mxu0 %v696_v53  ;;  %v138_v16 = vld [vmem:[#allocation7 + $0xd0] sm:$0xff]  ;;  %v168_v17 = vld [vmem:[#allocation8 + $0xc0] sm:$0xff]  ;;  %v736_v18 = vpack.c.bf16 %v171_v11, %v169_v10  ;;  %v141_v20 = vld [vmem:[#allocation7 + $0xe8] sm:$0xff] }
  0x80   :  { %729 = vmatprep.subr.bf16.mxu1 %v728_v57  ;;  %v170_v19 = vld [vmem:[#allocation8 + $0xd0] sm:$0xff]  ;;  %v143_v21 = vld [vmem:[#allocation7 + $0xf8] sm:$0xff]  ;;  %v173_v22 = vld [vmem:[#allocation8 + $0xe8] sm:$0xff]  ;;  %v706_v24 = vpack.c.bf16 %v138_v16, %v136_v15 }
  0x81   :  { %v175_v23 = vld [vmem:[#allocation8 + $0xf8] sm:$0xff]  ;;  %v738_v25 = vpack.c.bf16 %v170_v19, %v168_v17  ;;  %v708_v26 = vpack.c.bf16 %v143_v21, %v141_v20  ;;  %v140_v27 = vld [vmem:[#allocation7 + $0xe0] sm:$0xff]  ;;  %v142_v28 = vld [vmem:[#allocation7 + $0xf0] sm:$0xff] }
  0x82   :  { %699 = vmatpush1.bf16.msra.mxu0 %v698_v63  ;;  %v740_v29 = vpack.c.bf16 %v175_v23, %v173_v22  ;;  %v172_v30 = vld [vmem:[#allocation8 + $0xe0] sm:$0xff]  ;;  %v174_v31 = vld [vmem:[#allocation8 + $0xf0] sm:$0xff]  ;;  %v710_v32 = vpack.c.bf16 %v142_v28, %v140_v27  ;;  %v107_v35 = vld [vmem:[#allocation10 + $0x8] sm:$0xff] }
  0x83   :  { %731 = vmatpush1.bf16.msra.mxu1 %v730_v1  ;;  %701 = vmatprep.subr.bf16.mxu0 %v700_v2  ;;  %v742_v33 = vpack.c.bf16 %v174_v31, %v172_v30  ;;  %v106_v34 = vld [vmem:[#allocation10] sm:$0xff]  ;;  %v177_v36 = vld [vmem:[#allocation2 + $0x8] sm:$0xff]  ;;  %v179_v37 = vld [vmem:[#allocation2 + $0x18] sm:$0xff] }
  0x84   :  { %733 = vmatprep.subr.bf16.mxu1 %v732_v6  ;;  %v181_v38 = vld [vmem:[#allocation5 + $0x8] sm:$0xff]  ;;  %v744_v39 = vpack.c.bf16 %v179_v37, %v177_v36  ;;  %v183_v40 = vld [vmem:[#allocation5 + $0x18] sm:$0xff]  ;;  %v176_v41 = vld [vmem:[#allocation2] sm:$0xff] }
  0x85   :  { %v178_v42 = vld [vmem:[#allocation2 + $0x10] sm:$0xff]  ;;  %v752_v43 = vpack.c.bf16 %v183_v40, %v181_v38  ;;  %v180_v45 = vld [vmem:[#allocation5] sm:$0xff]  ;;  %v109_v61 = vld [vmem:[#allocation11 + $0x8] sm:$0xff] }
  0x86   :  { %703 = vmatpush1.bf16.msra.mxu0 %v702_v12  ;;  %v746_v44 = vpack.c.bf16 %v178_v42, %v176_v41  ;;  %v182_v46 = vld [vmem:[#allocation5 + $0x10] sm:$0xff]  ;;  %v110_v62 = vld [vmem:[#allocation11 + $0x10] sm:$0xff]  ;;  %v111_v63 = vld [vmem:[#allocation11 + $0x18] sm:$0xff] }
  0x87   :  { %735 = vmatpush1.bf16.msra.mxu1 %v734_v13  ;;  %705 = vmatprep.subr.bf16.mxu0 %v704_v14  ;;  %v754_v47 = vpack.c.bf16 %v182_v46, %v180_v45  ;;  %v108_v60 = vld [vmem:[#allocation11] sm:$0xff] }
  0x88   :  { %737 = vmatprep.subr.bf16.mxu1 %v736_v18 }
  0x8a   :  { %707 = vmatpush1.bf16.msra.mxu0 %v706_v24 }
  0x8b   :  { %739 = vmatpush1.bf16.msra.mxu1 %v738_v25  ;;  %709 = vmatprep.subr.bf16.mxu0 %v708_v26 }
  0x8c   :  { %741 = vmatprep.subr.bf16.mxu1 %v740_v29 }
  0x8e   :  { %711 = vmatpush1.bf16.msra.mxu0 %v710_v32 }
  0x8f   :  { %743 = vmatpush1.bf16.msra.mxu1 %v742_v33  ;;  %745 = vmatprep.subr.bf16.mxu0 %v744_v39 }
  0x90   :  { %753 = vmatprep.subr.bf16.mxu1 %v752_v43 }
  0x91   :  { %249 = vmatmul.mubr.f32.vlgmr.msra.gmra.mrb[0].mxu0 %v106_v34 }
  0x92   :  { %326 = vmatmul.mubr.f32.vlgmr.msra.gmra.mrb[0].mxu1 %v106_v34  ;;  %254 = vmatprep.mubr.f32.mxu0 %v951_v0 }
  0x93   :  { %331 = vmatprep.mubr.f32.mxu1 %v951_v0  ;;  %747 = vmatpush1.bf16.msra.mxu0 %v746_v44 }
  0x94   :  { %755 = vmatpush1.bf16.msra.mxu1 %v754_v47 }
  0x95   :  { %255 = vmatmul.mubr.f32.gmra.mrb[2].mxu0 %v107_v35 }
  0x96   :  { %332 = vmatmul.mubr.f32.gmra.mrb[2].mxu1 %v107_v35  ;;  %415 = vmatprep.mubr.f32.mxu0 %v951_v0 }
  0x97   :  { %504 = vmatprep.mubr.f32.mxu1 %v951_v0 }
 0x164   :  { %v250_v48 = vpop.f32.mrb[0].mxu0 }
 0x165   :  { %v327_v49 = vpop.f32.mrb[0].mxu1  ;;  %v252_v50 = vpop.f32.mrb[1].mxu0 }
 0x166   :  { %v329_v51 = vpop.f32.mrb[1].mxu1 }
 0x168   :  { %v256_v52 = vpop.f32.mrb[2].mxu0 }
 0x169   :  { %v750_v53 = vpack.c.bf16 %v256_v52, %v250_v48  ;;  %v333_v54 = vpop.f32.mrb[2].mxu1  ;;  %v258_v55 = vpop.f32.mrb[3].mxu0 }
 0x16a   :  { %v758_v56 = vpack.c.bf16 %v333_v54, %v327_v49  ;;  %v748_v57 = vpack.c.bf16 %v258_v55, %v252_v50  ;;  %v335_v58 = vpop.f32.mrb[3].mxu1 }
 0x16b   :  { %v756_v59 = vpack.c.bf16 %v335_v58, %v329_v51 }
 0x16c   :  { %749 = vmatprep.subr.bf16.mxu0 %v748_v57 }
 0x16d   :  { %757 = vmatprep.subr.bf16.mxu1 %v756_v59  ;;  %751 = vmatpush1.bf16.msra.mxu0 %v750_v53 }
 0x16e   :  { %759 = vmatpush1.bf16.msra.mxu1 %v758_v56 }
 0x170   :  { %672 = vmatmul.mubr.msk.f32.vlgmr.msra.gmra.mrb[4].mxu0 %vm338_vm0, %v108_v60 }
 0x171   :  { %676 = vmatmul.mubr.msk.f32.vlgmr.msra.gmra.mrb[4].mxu1 %vm338_vm0, %v108_v60  ;;  %421 = vmatprep.mubr.f32.mxu0 %v951_v0 }
 0x172   :  { %510 = vmatprep.mubr.f32.mxu1 %v951_v0 }
 0x174   :  { %673 = vmatmul.mubr.msk.f32.gmra.mrb[6].mxu0 %vm338_vm0, %v109_v61 }
 0x175   :  { %677 = vmatmul.mubr.msk.f32.gmra.mrb[6].mxu1 %vm338_vm0, %v109_v61  ;;  %427 = vmatprep.mubr.f32.mxu0 %v951_v0 }
 0x176   :  { %516 = vmatprep.mubr.f32.mxu1 %v951_v0 }
 0x178   :  { %674 = vmatmul.mubr.msk.f32.gmra.mrb[8].mxu0 %vm338_vm0, %v110_v62 }
 0x179   :  { %678 = vmatmul.mubr.msk.f32.gmra.mrb[8].mxu1 %vm338_vm0, %v110_v62  ;;  %433 = vmatprep.mubr.f32.mxu0 %v951_v0 }
 0x17a   :  { %522 = vmatprep.mubr.f32.mxu1 %v951_v0 }
 0x17c   :  { %675 = vmatmul.mubr.msk.f32.gmra.mrb[10].mxu0 %vm338_vm0, %v111_v63 }
 0x17d   :  { %679 = vmatmul.mubr.msk.f32.gmra.mrb[10].mxu1 %vm338_vm0, %v111_v63 }
 0x243   :  { %v417_v1 = vpop.f32.mrb[4].mxu0 }
 0x244   :  { %v529_v2 = vmax.f32 %v417_v1, 0.0  ;;  %v506_v3 = vpop.f32.mrb[4].mxu1  ;;  %v419_v4 = vpop.f32.mrb[5].mxu0 }
 0x245   :  { %v531_v5 = vmax.f32 %v506_v3, 0.0  ;;  %v530_v6 = vmax.f32 %v419_v4, 0.0  ;;  %v508_v7 = vpop.f32.mrb[5].mxu1 }
 0x246   :  { %v532_v8 = vmax.f32 %v508_v7, 0.0  ;;  %v571_v15 = vmul.f32 %v529_v2, %v529_v2 }
 0x247   :  { %v545_v9 = vmul.f32 %v531_v5, %v529_v2  ;;  %v423_v10 = vpop.f32.mrb[6].mxu0  ;;  %v597_v18 = vmul.f32 %v531_v5, %v531_v5  ;;  %v572_v19 = vmul.f32 %v530_v6, %v530_v6 }
 0x248   :  { %v546_v11 = vmul.f32 %v532_v8, %v530_v6  ;;  %v533_v12 = vmax.f32 %v423_v10, 0.0  ;;  %v512_v13 = vpop.f32.mrb[6].mxu1  ;;  %v425_v14 = vpop.f32.mrb[7].mxu0  ;;  %v598_v22 = vmul.f32 %v532_v8, %v532_v8 }
 0x249   :  { %v535_v0 = vmax.f32 %v512_v13, 0.0  ;;  %v534_v16 = vmax.f32 %v425_v14, 0.0  ;;  %v514_v17 = vpop.f32.mrb[7].mxu1 }
 0x24a   :  { %v573_v20 = vmul.f32 %v533_v12, %v533_v12  ;;  %v536_v21 = vmax.f32 %v514_v17, 0.0 }
 0x24b   :  { %v547_v23 = vmul.f32 %v535_v0, %v533_v12  ;;  %v599_v24 = vmul.f32 %v535_v0, %v535_v0  ;;  %v574_v25 = vmul.f32 %v534_v16, %v534_v16  ;;  %v429_v26 = vpop.f32.mrb[8].mxu0 }
 0x24c   :  { %v579_v27 = vadd.f32 %v573_v20, %v571_v15  ;;  %v548_v28 = vmul.f32 %v536_v21, %v534_v16  ;;  %v600_v29 = vmul.f32 %v536_v21, %v536_v21  ;;  %v537_v30 = vmax.f32 %v429_v26, 0.0  ;;  %v518_v31 = vpop.f32.mrb[8].mxu1  ;;  %v431_v32 = vpop.f32.mrb[9].mxu0 }
 0x24d   :  { %v553_v33 = vadd.f32 %v547_v23, %v545_v9  ;;  %v605_v34 = vadd.f32 %v599_v24, %v597_v18  ;;  %v588_v35 = vadd.f32 %v574_v25, %v572_v19  ;;  %v539_v36 = vmax.f32 %v518_v31, 0.0  ;;  %v520_v37 = vpop.f32.mrb[9].mxu1 }
 0x24e   :  { %v562_v38 = vadd.f32 %v548_v28, %v546_v11  ;;  %v614_v39 = vadd.f32 %v600_v29, %v598_v22  ;;  %v575_v40 = vmul.f32 %v537_v30, %v537_v30  ;;  %v538_v41 = vmax.f32 %v431_v32, 0.0 }
 0x24f   :  { %v549_v42 = vmul.f32 %v539_v36, %v537_v30  ;;  %v601_v43 = vmul.f32 %v539_v36, %v539_v36  ;;  %v540_v44 = vmax.f32 %v520_v37, 0.0  ;;  %v435_v45 = vpop.f32.mrb[10].mxu0 }
 0x250   :  { %v580_v46 = vadd.f32 %v579_v27, %v575_v40  ;;  %v576_v47 = vmul.f32 %v538_v41, %v538_v41  ;;  %v541_v48 = vmax.f32 %v435_v45, 0.0  ;;  %v524_v49 = vpop.f32.mrb[10].mxu1  ;;  %v437_v50 = vpop.f32.mrb[11].mxu0 }
 0x251   :  { %v554_v51 = vadd.f32 %v553_v33, %v549_v42  ;;  %v606_v52 = vadd.f32 %v605_v34, %v601_v43  ;;  %v550_v53 = vmul.f32 %v540_v44, %v538_v41  ;;  %v602_v54 = vmul.f32 %v540_v44, %v540_v44  ;;  %v526_v55 = vpop.f32.mrb[11].mxu1 }
 0x252   :  { %v589_v56 = vadd.f32 %v588_v35, %v576_v47  ;;  %v577_v57 = vmul.f32 %v541_v48, %v541_v48  ;;  %v543_v58 = vmax.f32 %v524_v49, 0.0  ;;  %v542_v59 = vmax.f32 %v437_v50, 0.0 }
 0x253   :  { %v563_v60 = vadd.f32 %v562_v38, %v550_v53  ;;  %v615_v61 = vadd.f32 %v614_v39, %v602_v54  ;;  %v544_v62 = vmax.f32 %v526_v55, 0.0 }
 0x254   :  { %v581_v63 = vadd.f32 %v580_v46, %v577_v57  ;;  %v551_v1 = vmul.f32 %v543_v58, %v541_v48  ;;  %v603_v2 = vmul.f32 %v543_v58, %v543_v58  ;;  %v578_v3 = vmul.f32 %v542_v59, %v542_v59 }
 0x255   :  { %v552_v4 = vmul.f32 %v544_v62, %v542_v59  ;;  %v604_v5 = vmul.f32 %v544_v62, %v544_v62  ;;  %v952_v46 = vmov 1966171168   ;;  %v637_v48 = vlaneseq }
 0x256   :  { %v582_v6 = vrot.slane %v581_v63, 4  ;;  %v555_v7 = vadd.f32 %v554_v51, %v551_v1  ;;  %v607_v8 = vadd.f32 %v606_v52, %v603_v2  ;;  %v590_v9 = vadd.f32 %v589_v56, %v578_v3 }
 0x257   :  { %v564_v10 = vadd.f32 %v563_v60, %v552_v4  ;;  %v616_v11 = vadd.f32 %v615_v61, %v604_v5  ;;  %v635_v47 = vunpack.c.l.s4 %v952_v46  ;;  %v638_v52 = vshrl.u32 %v637_v48, 7 }
 0x258   :  { %v583_v12 = vadd.f32 %v582_v6, %v581_v63  ;;  %v608_v13 = vrot.slane %v607_v8, 4  ;;  %v591_v14 = vrot.slane %v590_v9, 4  ;;  %v556_v22 = vrot.slane %v555_v7, 4 }
 0x259   :  { %v617_v15 = vrot.slane %v616_v11, 4  ;;  %v565_v27 = vrot.slane %v564_v10, 4  ;;  %v636_v51 = vunpack.c.0.s8 %v635_v47  ;;  %vm651_vm1 = vcmp.lt.s32.totalorder %v637_v48, 256 }
 0x25a   :  { %v584_v0 = vrot.slane %v583_v12, 2  ;;  %v609_v16 = vadd.f32 %v608_v13, %v607_v8  ;;  %v592_v17 = vadd.f32 %v591_v14, %v590_v9  ;;  %v557_v32 = vadd.f32 %v556_v22, %v555_v7 }
 0x25b   :  { %v618_v18 = vadd.f32 %v617_v15, %v616_v11  ;;  %v566_v36 = vadd.f32 %v565_v27, %v564_v10  ;;  %v639_v59 = vsub.s32 %v636_v51, %v638_v52 }
 0x25c   :  { %v585_v19 = vadd.f32 %v584_v0, %v583_v12  ;;  %v610_v20 = vrot.slane %v609_v16, 2  ;;  %v593_v21 = vrot.slane %v592_v17, 2  ;;  %v558_v39 = vrot.slane %v557_v32, 2 }
 0x25d   :  { %v619_v23 = vrot.slane %v618_v18, 2  ;;  %v567_v42 = vrot.slane %v566_v36, 2 }
 0x25e   :  { %v586_v24 = vrot.slane %v585_v19, 1  ;;  %v611_v25 = vadd.f32 %v610_v20, %v609_v16  ;;  %v594_v26 = vadd.f32 %v593_v21, %v592_v17  ;;  %v559_v44 = vadd.f32 %v558_v39, %v557_v32 }
 0x25f   :  { %v620_v28 = vadd.f32 %v619_v23, %v618_v18  ;;  %v568_v45 = vadd.f32 %v567_v42, %v566_v36 }
 0x260   :  { %v587_v29 = vadd.f32 %v586_v24, %v585_v19  ;;  %v612_v30 = vrot.slane %v611_v25, 1  ;;  %v595_v31 = vrot.slane %v594_v26, 1  ;;  %v560_v49 = vrot.slane %v559_v44, 1 }
 0x261   :  { %v621_v33 = vrot.slane %v620_v28, 1  ;;  %v569_v50 = vrot.slane %v568_v45, 1 }
 0x262   :  { %v613_v34 = vadd.f32 %v612_v30, %v611_v25  ;;  %v596_v35 = vadd.f32 %v595_v31, %v594_v26  ;;  %v561_v53 = vadd.f32 %v560_v49, %v559_v44 }
 0x263   :  { %v622_v37 = vadd.f32 %v621_v33, %v620_v28  ;;  %v570_v55 = vadd.f32 %v569_v50, %v568_v45 }
 0x264   :  { %v623_v38 = vmul.f32 %v613_v34, %v587_v29 }
 0x265   :  { %v624_v40 = vmul.f32 %v622_v37, %v596_v35 }
 0x266   :  { %v625_v41 = vmax.f32 %v623_v38, 1e-16 }
 0x267   :  { %v626_v43 = vmax.f32 %v624_v40, 1e-16 }
 0x268   :  { %773 = vrsqrt.f32 %v625_v41 }
 0x269   :  { %775 = vrsqrt.f32 %v626_v43 }
 0x272   :  { %v774_v54 = vpop.eup %773 }
 0x273   :  { %v776_v56 = vpop.eup %775  ;;  %v629_v57 = vmul.f32 %v774_v54, %v561_v53 }
 0x274   :  { %v630_v58 = vmul.f32 %v776_v56, %v570_v55 }
 0x276   :  { %v633_v60 = vcombine.low %v629_v57, %v630_v58 }
 0x278   :  { %v640_v61 = vrot.slane %v633_v60, %v639_v59 }
 0x27a   :  { %v647_v62 = vrot.slane %v640_v61, %v639_v59 }
 0x27c   :  { %653 = vst.msk [vmem:[#allocation13] sm:$0x3] %vm651_vm1, %v647_v62 }
 0x27d   :  { %920 = shalt.err (!%p917_p10)
}
 0x27e   :  { %s921_s22 = scalar_lea.hbm %s1125_s6, 32 }
 0x27f   :  { %p922_p11 = scmp.ne.s32.totalorder %s1125_s6, %s921_s22  ;;  %p925_p12 = scmp.lt.u32.totalorder %s921_s22, %s1125_s6 }
 0x281   :  { %p927_p13 = pnand %p925_p12, %p922_p11 }
 0x283   :  { %930 = shalt.err (!%p927_p13)
}
 0x284   :  { %663 = dma.vmem_to_hbm [thread:$0]  %s661_s20, 32, %s1125_s6, [#allocation4]  }
 0x285   :  { %939 = dma.done.wait [#allocation4], 32  }
 0x286   :  { %940 = vsyncadd [#allocation4], 4294967264 }
 0x287   :  { %667 = vsyncpa [#allocation3], 1 }
 0x288   :  { %668 = vsyncpa [#allocation6], 1 }
 0x289   :  { %669 = vsyncpa [#allocation9], 1 }
 0x28a   :  { %670 = vsyncpa [#allocation12], 1 }
 0x28b   :  { %671 = vsyncpa [#allocation4], 1 }

</bundles_post_ra>
